<compile_context>
chip_gen: v7x
topology: tpu7x:2x2x1
jax: 0.10.0
libtpu: 0.0.40
codegen_flags: <defaults>
</compile_context>

<pallas_src>
import jax
import jax.numpy as jnp
from jax.experimental import pallas as pl
from jax.experimental.pallas import tpu as pltpu

N_EMBD = 64
HIDDEN = 4 * N_EMBD   # 256
DROPOUT_P = 0.0       # nn.Dropout(0.0) == identity


def ffn_kernel(x_ref, w1_ref, b1_ref, w2_ref, b2_ref, o_ref):
    # x:  (tile_m, 64)  bf16     w1: (64, 256) bf16    b1: (1, 256) f32
    # w2: (256, 64)     bf16     b2: (1, 64)   f32     o:  (tile_m, 64) out dtype
    # bf16 operands into the MXU, f32 accumulation.
    h = jnp.dot(x_ref[...], w1_ref[...], preferred_element_type=jnp.float32)
    # Bias + ReLU in the f32 accumulator (portable: v5e has no bf16 VALU).
    h = jnp.maximum(h + b1_ref[...], 0.0)
    # Single cast back to bf16 to feed the second MXU pass.
    y = jnp.dot(h.astype(w2_ref.dtype), w2_ref[...],
                preferred_element_type=jnp.float32)
    y = y + b2_ref[...]
    # Dropout with p=0.0 is a no-op (matches PyTorch semantics exactly).
    o_ref[...] = y.astype(o_ref.dtype)


def _choose_tile_m(m: int, max_tile: int = 4096, min_split: int = 256) -> int:
    """Balanced row tile.

    * multiple of 8 (sublane-legal) whenever we actually split,
    * >= 2 grid steps when m > min_split so both v7x TensorCores get work,
    * tiles ~equal sized so the tail tile is not a mostly-padded block,
    * capped at max_tile rows: with bf16 x / f32 out / f32 hidden temp the
      double-buffered working set stays ~10-12 MiB, safe on every generation.
    """
    if m <= min_split:
        return m                        # full extent -> always a legal block shape
    n_steps = max(2, pl.cdiv(m, max_tile))
    tile = pl.cdiv(m, n_steps)
    tile = ((tile + 7) // 8) * 8        # round up to a sublane multiple
    return min(tile, m)


def feedforward(x, w1, b1, w2, b2, *, compute_dtype=jnp.bfloat16):
    """x: (..., n_embd) -> (..., n_embd), output in x's original dtype."""
    orig_shape = x.shape
    out_dtype = x.dtype
    m = 1
    for d in orig_shape[:-1]:
        m *= d

    # MXU operands in bf16 (cast once here; no-op if caller already holds bf16).
    x2d = x.reshape(m, N_EMBD).astype(compute_dtype)
    w1c = w1.astype(compute_dtype)
    w2c = w2.astype(compute_dtype)
    # Biases pre-cast to the f32 epilogue dtype (drops the per-tile cast pass).
    b1c = jnp.asarray(b1).reshape(1, HIDDEN).astype(jnp.float32)
    b2c = jnp.asarray(b2).reshape(1, N_EMBD).astype(jnp.float32)

    tile_m = _choose_tile_m(m)
    grid = (pl.cdiv(m, tile_m),)

    cost = pl.CostEstimate(
        flops=2 * m * N_EMBD * HIDDEN * 2,          # two matmuls
        transcendentals=0,
        bytes_accessed=(
            x2d.size * x2d.dtype.itemsize           # x in (bf16)
            + w1c.size * w1c.dtype.itemsize         # w1
            + b1c.size * 4                          # b1 (f32)
            + w2c.size * w2c.dtype.itemsize         # w2
            + b2c.size * 4                          # b2 (f32)
            + m * N_EMBD * jnp.dtype(out_dtype).itemsize   # out
        ),
    )

    out2d = pl.pallas_call(
        ffn_kernel,
        out_shape=jax.ShapeDtypeStruct((m, N_EMBD), out_dtype),
        grid=grid,
        in_specs=[
            pl.BlockSpec((tile_m, N_EMBD), lambda i: (i, 0)),   # x: streamed tiles
            pl.BlockSpec((N_EMBD, HIDDEN), lambda i: (0, 0)),   # w1: VMEM-resident
            pl.BlockSpec((1, HIDDEN), lambda i: (0, 0)),        # b1: VMEM-resident
            pl.BlockSpec((HIDDEN, N_EMBD), lambda i: (0, 0)),   # w2: VMEM-resident
            pl.BlockSpec((1, N_EMBD), lambda i: (0, 0)),        # b2: VMEM-resident
        ],
        out_specs=pl.BlockSpec((tile_m, N_EMBD), lambda i: (i, 0)),
        compiler_params=pltpu.CompilerParams(
            dimension_semantics=("parallel",),      # megacore sharding on v7x
            vmem_limit_bytes=48 * 1024 * 1024,      # headroom; fits v7x 64 MiB/TC
        ),
        cost_estimate=cost,
    )(x2d, w1c, b1c, w2c, b2c)

    return out2d.reshape(orig_shape)


def init_params(key, n_embd=N_EMBD, hidden=HIDDEN, dtype=jnp.float32):
    """Deterministic init mirroring nn.Linear's U(-1/sqrt(fan_in), 1/sqrt(fan_in))."""
    k1, k2, k3, k4 = jax.random.split(key, 4)
    bound1 = 1.0 / (n_embd ** 0.5)
    bound2 = 1.0 / (hidden ** 0.5)
    # Stored as (in, out) so the kernel computes x @ W directly
    # (PyTorch stores weight as (out, in) and does x @ W.T -- same math).
    w1 = jax.random.uniform(k1, (n_embd, hidden), dtype, -bound1, bound1)
    b1 = jax.random.uniform(k2, (1, hidden), dtype, -bound1, bound1)
    w2 = jax.random.uniform(k3, (hidden, n_embd), dtype, -bound2, bound2)
    b2 = jax.random.uniform(k4, (1, n_embd), dtype, -bound2, bound2)
    return w1, b1, w2, b2


if __name__ == "__main__":
    key = jax.random.PRNGKey(0)
    kx, kp = jax.random.split(key)

    # Small shapes consistent with the module: (batch, seq, n_embd)
    B, T = 2, 8
    x = jax.random.normal(kx, (B, T, N_EMBD), dtype=jnp.float32)
    w1, b1, w2, b2 = init_params(kp)

    out = feedforward(x, w1, b1, w2, b2)
    out = jax.block_until_ready(out)
    assert out.shape == (B, T, N_EMBD)
    assert out.dtype == x.dtype

    # Reference with matching bf16 MXU operands / f32 accumulation.
    def ref_fn(xin):
        xb = xin.reshape(-1, N_EMBD).astype(jnp.bfloat16)
        h = jnp.dot(xb, w1.astype(jnp.bfloat16),
                    preferred_element_type=jnp.float32)
        h = jnp.maximum(h + b1.astype(jnp.float32), 0.0)
        y = jnp.dot(h.astype(jnp.bfloat16), w2.astype(jnp.bfloat16),
                    preferred_element_type=jnp.float32)
        y = y + b2.astype(jnp.float32)
        return y.reshape(xin.shape).astype(xin.dtype)

    assert jnp.allclose(out, ref_fn(x), atol=2e-3, rtol=2e-3)

    # Also exercise the multi-step / padded-tail tiling path (still small).
    x2 = jax.random.normal(kx, (3, 200, N_EMBD), dtype=jnp.float32)  # m=600 -> 2 tiles
    out2 = jax.block_until_ready(feedforward(x2, w1, b1, w2, b2))
    assert jnp.allclose(out2, ref_fn(x2), atol=2e-3, rtol=2e-3)

    print("KERNEL_OK")
</pallas_src>

<mosaic_0001>
module attributes {stable_mosaic.version = 11 : i64} {
  func.func @ffn_kernel(%arg0: i32, %arg1: memref<16x64xbf16, #tpu.memory_space<vmem>>, %arg2: memref<64x256xbf16, #tpu.memory_space<vmem>>, %arg3: memref<1x256xf32, #tpu.memory_space<vmem>>, %arg4: memref<256x64xbf16, #tpu.memory_space<vmem>>, %arg5: memref<1x64xf32, #tpu.memory_space<vmem>>, %arg6: memref<16x64xf32, #tpu.memory_space<vmem>>) attributes {dimension_semantics = [#tpu.dimension_semantics<parallel>], iteration_bounds = array<i64: 1>, scalar_prefetch = 0 : i64, scratch_operands = 0 : i64, tpu.core_type = #tpu.core_type<tc>, window_params = [{transform_indices = @transform_0, window_bounds = array<i64: 16, 64>}, {pipeline_mode = #tpu.pipeline_mode<synchronous>, transform_indices = @transform_1, window_bounds = array<i64: 64, 256>}, {pipeline_mode = #tpu.pipeline_mode<synchronous>, transform_indices = @transform_2, window_bounds = array<i64: 1, 256>}, {pipeline_mode = #tpu.pipeline_mode<synchronous>, transform_indices = @transform_3, window_bounds = array<i64: 256, 64>}, {pipeline_mode = #tpu.pipeline_mode<synchronous>, transform_indices = @transform_4, window_bounds = array<i64: 1, 64>}, {transform_indices = @transform_5, window_bounds = array<i64: 16, 64>}]} {
    %c0 = arith.constant 0 : index
    %c0_0 = arith.constant 0 : index
    %0 = vector.load %arg1[%c0, %c0_0] : memref<16x64xbf16, #tpu.memory_space<vmem>>, vector<16x64xbf16>
    %c0_1 = arith.constant 0 : index
    %c0_2 = arith.constant 0 : index
    %1 = vector.load %arg2[%c0_1, %c0_2] : memref<64x256xbf16, #tpu.memory_space<vmem>>, vector<64x256xbf16>
    %cst = arith.constant dense<0.000000e+00> : vector<16x256xf32>
    %2 = tpu.matmul %0, %1, %cst {dimension_numbers = #tpu.dot_dimension_numbers<[1], [0], [0], [1], [0, 0, 1, 1], [], []>} : vector<16x64xbf16>, vector<64x256xbf16>, vector<16x256xf32> -> vector<16x256xf32>
    %c0_3 = arith.constant 0 : index
    %c0_4 = arith.constant 0 : index
    %3 = vector.load %arg3[%c0_3, %c0_4] : memref<1x256xf32, #tpu.memory_space<vmem>>, vector<1x256xf32>
    %4 = vector.broadcast %3 : vector<1x256xf32> to vector<16x256xf32>
    %5 = arith.addf %2, %4 : vector<16x256xf32>
    %cst_5 = arith.constant 0.000000e+00 : f32
    %6 = vector.broadcast %cst_5 : f32 to vector<16x256xf32>
    %7 = arith.maximumf %5, %6 : vector<16x256xf32>
    %8 = arith.truncf %7 : vector<16x256xf32> to vector<16x256xbf16>
    %c0_6 = arith.constant 0 : index
    %c0_7 = arith.constant 0 : index
    %9 = vector.load %arg4[%c0_6, %c0_7] : memref<256x64xbf16, #tpu.memory_space<vmem>>, vector<256x64xbf16>
    %cst_8 = arith.constant dense<0.000000e+00> : vector<16x64xf32>
    %10 = tpu.matmul %8, %9, %cst_8 {dimension_numbers = #tpu.dot_dimension_numbers<[1], [0], [0], [1], [0, 0, 1, 1], [], []>} : vector<16x256xbf16>, vector<256x64xbf16>, vector<16x64xf32> -> vector<16x64xf32>
    %c0_9 = arith.constant 0 : index
    %c0_10 = arith.constant 0 : index
    %11 = vector.load %arg5[%c0_9, %c0_10] : memref<1x64xf32, #tpu.memory_space<vmem>>, vector<1x64xf32>
    %12 = vector.broadcast %11 : vector<1x64xf32> to vector<16x64xf32>
    %13 = arith.addf %10, %12 : vector<16x64xf32>
    %c0_11 = arith.constant 0 : index
    %c0_12 = arith.constant 0 : index
    %14 = vector.load %arg6[%c0_11, %c0_12] : memref<16x64xf32, #tpu.memory_space<vmem>>, vector<16x64xf32>
    tpu.vector_store %arg6[%c0_11, %c0_12], %13 {strides = array<i32>} : memref<16x64xf32, #tpu.memory_space<vmem>>, vector<16x64xf32>,
    return
  }
  func.func @transform_0(%arg0: i32) -> (i32, i32) {
    %c0_i32 = arith.constant 0 : i32
    %c0_i32_0 = arith.constant 0 : i32
    return %arg0, %c0_i32 : i32, i32
  }
  func.func @transform_1(%arg0: i32) -> (i32, i32) {
    %c0_i32 = arith.constant 0 : i32
    %c0_i32_0 = arith.constant 0 : i32
    %c0_i32_1 = arith.constant 0 : i32
    return %c0_i32, %c0_i32_0 : i32, i32
  }
  func.func @transform_2(%arg0: i32) -> (i32, i32) {
    %c0_i32 = arith.constant 0 : i32
    %c0_i32_0 = arith.constant 0 : i32
    %c0_i32_1 = arith.constant 0 : i32
    return %c0_i32, %c0_i32_0 : i32, i32
  }
  func.func @transform_3(%arg0: i32) -> (i32, i32) {
    %c0_i32 = arith.constant 0 : i32
    %c0_i32_0 = arith.constant 0 : i32
    %c0_i32_1 = arith.constant 0 : i32
    return %c0_i32, %c0_i32_0 : i32, i32
  }
  func.func @transform_4(%arg0: i32) -> (i32, i32) {
    %c0_i32 = arith.constant 0 : i32
    %c0_i32_0 = arith.constant 0 : i32
    %c0_i32_1 = arith.constant 0 : i32
    return %c0_i32, %c0_i32_0 : i32, i32
  }
  func.func @transform_5(%arg0: i32) -> (i32, i32) {
    %c0_i32 = arith.constant 0 : i32
    %c0_i32_0 = arith.constant 0 : i32
    return %arg0, %c0_i32 : i32, i32
  }
}

</mosaic_0001>

<bundles_post_ra>
// kernel: tpu_custom_call.1
= control target key start
LH: loop header
LB: loop body
LE: loop exit
PB: predicated region body
PF: predicated region fallthrough
CT: control target
= control target key end

     0   :  { %v442_v2 = vmov 0   ;;  %vm89_vm0 = vcmask 523264   ;;  %s572_s0 = inlined_call_operand.vmem [shape: bf16[16,64], index: 0, kind: input, shape index: {}]   ;;  %s573_s1 = inlined_call_operand.vmem [shape: bf16[64,256], index: 1, kind: input, shape index: {}]   ;;  %s574_s2 = inlined_call_operand.vmem [shape: f32[1,256], index: 2, kind: input, shape index: {}]   ;;  %s575_s3 = inlined_call_operand.vmem [shape: bf16[256,64], index: 3, kind: input, shape index: {}]   ;;  %s576_s4 = inlined_call_operand.vmem [shape: f32[1,64], index: 4, kind: input, shape index: {}]   ;;  %s577_s5 = inlined_call_operand.hbm [shape: f32[16,64], index: 5, kind: output, shape index: {}]  }
   0x1   :  { %v389_v0 = vld [vmem:[%s573_s1 + $0x4] ss:$8 sps:$4 sm:$0xff]   ;;  %v391_v1 = vld [vmem:[%s573_s1] ss:$8 sps:$4 sm:$0xff]   ;;  %125 = vmatprep.mubr.bf16.mxu0 %v442_v2  ;;  %v392_v3 = vld [vmem:[%s573_s1 + $0x14] ss:$8 sps:$4 sm:$0xff]  }
   0x2   :  { %93 = vmatprep.subr.bf16.mxu0 %v389_v0  ;;  %v394_v4 = vld [vmem:[%s573_s1 + $0x10] ss:$8 sps:$4 sm:$0xff]   ;;  %v395_v5 = vld [vmem:[%s573_s1 + $0x24] ss:$8 sps:$4 sm:$0xff]   ;;  %v397_v6 = vld [vmem:[%s573_s1 + $0x20] ss:$8 sps:$4 sm:$0xff]  }
   0x3   :  { %94 = vmatpush1.bf16.msra.mxu0 %v391_v1  ;;  %v398_v7 = vld [vmem:[%s573_s1 + $0x34] ss:$8 sps:$4 sm:$0xff]   ;;  %v402_v8 = vld [vmem:[%s575_s3 + $0x40] sm:$0xff]   ;;  %v400_v10 = vld [vmem:[%s573_s1 + $0x30] ss:$8 sps:$4 sm:$0xff]  }
   0x4   :  { %95 = vmatprep.subr.bf16.mxu0 %v392_v3  ;;  %v403_v9 = vld [vmem:[%s575_s3] sm:$0xff]   ;;  %363 = vmatprep.subr.bf16.mxu1 %v402_v8  ;;  %v404_v11 = vld [vmem:[%s575_s3 + $0x48] sm:$0xff]   ;;  %v406_v13 = vld [vmem:[%s575_s3 + $0x50] sm:$0xff]  }
   0x5   :  { %364 = vmatpush3.bf16.msra.mxu1 %v403_v9  ;;  %v405_v12 = vld [vmem:[%s575_s3 + $0x8] sm:$0xff]   ;;  %v401_v14 = vld [vmem:[%s572_s0] sm:$0xff]   ;;  %v407_v15 = vld [vmem:[%s575_s3 + $0x10] sm:$0xff]  }
   0x6   :  { %365 = vmatprep.subr.bf16.mxu1 %v404_v11  ;;  %v408_v16 = vld [vmem:[%s575_s3 + $0x58] sm:$0xff]   ;;  %v410_v18 = vld [vmem:[%s575_s3 + $0x60] sm:$0xff]  }
   0x7   :  { %96 = vmatpush1.bf16.msra.mxu0 %v394_v4  ;;  %v409_v17 = vld [vmem:[%s575_s3 + $0x18] sm:$0xff]  }
   0x8   :  { %97 = vmatprep.subr.bf16.mxu0 %v395_v5 }
   0x9   :  { %366 = vmatpush3.bf16.msra.mxu1 %v405_v12 }
   0xa   :  { %367 = vmatprep.subr.bf16.mxu1 %v406_v13 }
   0xb   :  { %98 = vmatpush1.bf16.msra.mxu0 %v397_v6 }
   0xc   :  { %99 = vmatprep.subr.bf16.mxu0 %v398_v7 }
   0xd   :  { %368 = vmatpush3.bf16.msra.mxu1 %v407_v15 }
   0xe   :  { %369 = vmatprep.subr.bf16.mxu1 %v408_v16 }
   0xf   :  { %100 = vmatpush1.bf16.msra.mxu0 %v400_v10 }
  0x12   :  { %345 = vmatmul.mubr.msk.bf16.vlgmr.msra.gmra.mrb[0].mxu0 %vm89_vm0, %v401_v14 }
  0x13   :  { %10 = vsyncpa [#allocation3], 0  ;;  %370 = vmatpush3.bf16.msra.mxu1 %v409_v17  ;;  %v411_v19 = vld [vmem:[%s575_s3 + $0x20] sm:$0xff]   ;;  %v412_v20 = vld [vmem:[%s575_s3 + $0x68] sm:$0xff]   ;;  %v34_v26 = vlaneseq  ;;  %s443_s18 = smov [#allocation2]  }
  0x14   :  { %371 = vmatprep.subr.bf16.mxu1 %v410_v18  ;;  %v413_v21 = vld [vmem:[%s575_s3 + $0x28] sm:$0xff]   ;;  %v414_v22 = vld [vmem:[%s575_s3 + $0x70] sm:$0xff]   ;;  %v416_v24 = vld [vmem:[%s575_s3 + $0x78] sm:$0xff]   ;;  %s325_s19 = sshll.u32 %s443_s18, 4  ;;  %s326_s19 = int_to_ptr.vmem [resolvable:$true] %s325_s19 }
  0x15   :  { %v415_v23 = vld [vmem:[%s575_s3 + $0x30] sm:$0xff]   ;;  %v417_v25 = vld [vmem:[%s575_s3 + $0x38] sm:$0xff]   ;;  %v35_v27 = vshrl.u32 %v34_v26, 7  ;;  %v32_v29 = vld [vmem:[%s574_s2] sm:$0x3]  ;;  %s418_s20 = scalar_lea.vmem %s326_s19, 256  ;;  %p423_p1 = scmp.lt.s32.totalorder %s326_s19, %s326_s19 }
  0x16   :  { %v346_v48 = vld [vmem:[%s576_s4] ss:$0 sm:$0xff]  ;;  %p419_p0 = scmp.ne.s32.totalorder %s326_s19, %s418_s20  ;;  %p424_p2 = scmp.lt.s32.totalorder %s418_s20, %s418_s20 }
  0x17   :  { %372 = vmatpush3.bf16.msra.mxu1 %v411_v19  ;;  %v36_v28 = vsub.s32 0, %v35_v27  ;;  %v40_v30 = vsub.s32 1, %v35_v27 }
  0x18   :  { %373 = vmatprep.subr.bf16.mxu1 %v412_v20  ;;  %p425_p3 = por %p424_p2, %p423_p1 }
  0x19   :  { %v37_v31 = vrot.slane %v32_v29, %v36_v28  ;;  %v41_v32 = vrot.slane %v32_v29, %v40_v30 }
  0x1a   :  { %p426_p4 = pnand %p425_p3, %p419_p0 }
  0x1b   :  { %374 = vmatpush3.bf16.msra.mxu1 %v413_v21 }
  0x1c   :  { %375 = vmatprep.subr.bf16.mxu1 %v414_v22 }
  0x1f   :  { %376 = vmatpush3.bf16.msra.mxu1 %v415_v23 }
  0x20   :  { %377 = vmatprep.subr.bf16.mxu1 %v416_v24 }
  0x23   :  { %378 = vmatpush3.bf16.msra.mxu1 %v417_v25 }
  0xe5   :  { %v127_v33 = vpop.f32.mrb[0].mxu0 }
  0xe6   :  { %v128_v34 = vadd.f32 %v127_v33, %v37_v31  ;;  %v129_v35 = vpop.f32.mrb[1].mxu0 }
  0xe7   :  { %v130_v36 = vadd.f32 %v129_v35, %v41_v32  ;;  %v131_v37 = vpop.f32.mrb[2].mxu0 }
  0xe8   :  { %v132_v38 = vadd.f32 %v131_v37, %v37_v31  ;;  %v133_v39 = vpop.f32.mrb[3].mxu0  ;;  %v136_v41 = vmax.f32 %v128_v34, 0.0 }
  0xe9   :  { %v134_v40 = vadd.f32 %v133_v39, %v41_v32  ;;  %v137_v43 = vmax.f32 %v130_v36, 0.0 }
  0xea   :  { %v138_v42 = vmax.f32 %v132_v38, 0.0 }
  0xeb   :  { %v139_v44 = vmax.f32 %v134_v40, 0.0 }
  0xec   :  { %v140_v45 = vpack.c.bf16 %v138_v42, %v136_v41 }
  0xed   :  { %v141_v46 = vpack.c.bf16 %v139_v44, %v137_v43 }
  0xef   :  { %309 = vmatprep.mubr.bf16.mxu1 %v141_v46 }
  0xf0   :  { %310 = vmatmul.mubr.bf16.vlgmr.msra.gmra.mrb[0].mxu1 %v140_v45 }
 0x1c3   :  { %v379_v47 = vpop.f32.mrb[0].mxu1 }
 0x1c4   :  { %v380_v49 = vpop.f32.mrb[1].mxu1 }
 0x1c5   :  { %v381_v50 = vadd.f32 %v380_v49, %v379_v47  ;;  %v382_v51 = vpop.f32.mrb[2].mxu1 }
 0x1c6   :  { %v383_v52 = vpop.f32.mrb[3].mxu1 }
 0x1c7   :  { %v312_v53 = vadd.f32 %v381_v50, %v346_v48  ;;  %v384_v54 = vadd.f32 %v383_v52, %v382_v51 }
 0x1c9   :  { %318 = vst.msk [vmem:[#allocation2] sm:$0xff] %vm89_vm0, %v312_v53  ;;  %v315_v55 = vadd.f32 %v384_v54, %v346_v48 }
 0x1cb   :  { %319 = vst.msk [vmem:[#allocation2 + $0x8] sm:$0xff] %vm89_vm0, %v315_v55 }
 0x1cc   :  { %429 = shalt.err (!%p426_p4)
}
 0x1cd   :  { %s430_s21 = scalar_lea.hbm %s577_s5, 256 }
 0x1ce   :  { %p431_p5 = scmp.ne.s32.totalorder %s577_s5, %s430_s21  ;;  %p434_p6 = scmp.lt.u32.totalorder %s430_s21, %s577_s5 }
 0x1d0   :  { %p436_p7 = pnand %p434_p6, %p431_p5 }
 0x1d2   :  { %439 = shalt.err (!%p436_p7)
}
 0x1d3   :  { %s444_s26 = smov 128   ;;  %s445_s27 = smov 8  }
 0x1d4   :  { %331 = dma.vmem_to_hbm [thread:$0]  %s326_s19, 256, %s577_s5, [#allocation3], %s444_s26, %s444_s26, %s445_s27  }
 0x1d5   :  { %440 = dma.done.wait [#allocation3], 256  }
 0x1d6   :  { %441 = vsyncadd [#allocation3], 4294967040 }
 0x1d7   :  { %335 = vsyncpa [#allocation3], 1 }

</bundles_post_ra>
